<compile_context>
chip_gen: v7x
topology: tpu7x:2x2x1
jax: 0.10.0
libtpu: 0.0.40
codegen_flags: <defaults>
</compile_context>

<pallas_src>
import functools
import re

import jax
import jax.numpy as jnp
import numpy as np
from jax.experimental import pallas as pl
from jax.experimental.pallas import tpu as pltpu

LANES = 128
_FUNC_TO_ID = {"T": 0, "S": 1, "D": 2}


# ---------------------------------------------------------------------------
# Host-side parameter construction (mirrors HarmonicAttention.__init__)
# ---------------------------------------------------------------------------
def create_function_map(chord_to_idx):
    function_map = {}
    for chord in chord_to_idx:
        root = re.sub("[^A-G#b]", "", chord).upper()
        if "dim" in chord:
            function_map[chord] = "D"
        elif "aug" in chord:
            function_map[chord] = "T"
        elif any(ext in chord for ext in ["7", "9", "11", "13"]):
            if "m" in chord:
                function_map[chord] = "S"
            elif "sus" in chord:
                function_map[chord] = "D"
            else:
                function_map[chord] = "D"
        elif "6" in chord or "69" in chord:
            function_map[chord] = "T"
        elif "maj" in chord.lower():
            function_map[chord] = "T"
        else:
            function_map[chord] = (
                "T" if root in ["I"] else "S" if root in ["II", "IV"] else "D"
            )
    return function_map


def create_transition_matrix():
    return {
        "T": {"S": 0.8, "D": 0.9, "T": 0.1},
        "S": {"D": 1.0, "T": 0.7, "S": 0.2},
        "D": {"T": 1.0, "S": 0.3, "D": 0.1},
    }


def build_tables(chord_to_idx):
    """func_ids: tuple[int] length C (0=T,1=S,2=D); trans_vals: tuple[float] length 9."""
    function_map = create_function_map(chord_to_idx)
    num_chords = len(chord_to_idx)
    func_ids = [0] * num_chords
    for chord, idx in chord_to_idx.items():
        func_ids[idx] = _FUNC_TO_ID[function_map[chord]]
    tm = create_transition_matrix()
    order = ["T", "S", "D"]
    trans_vals = [float(tm[cf][nf]) for cf in order for nf in order]
    return tuple(func_ids), tuple(trans_vals), function_map, tm


def _round_up(x, m):
    return (x + m - 1) // m * m


# ---------------------------------------------------------------------------
# Pallas kernel
# ---------------------------------------------------------------------------
def harmonic_attention_kernel(curr_ref, next_ref, out_ref, *, func_ids, trans_vals):
    curr = curr_ref[...]  # (blk, 128) int32 chord indices
    nxt = next_ref[...]   # (blk, 128) int32 chord indices

    # chord index -> function id, unrolled int32 compare/where chain (VALU only).
    # Default 0 (= 'T') matches the PyTorch `.get(chord, 'T')` fallback.
    # TODO(synk): for very large chord vocabularies (hundreds+), switch this
    #             O(C) chain to a VMEM-table gather.
    curr_func = jnp.zeros_like(curr)
    next_func = jnp.zeros_like(nxt)
    for c, fid in enumerate(func_ids):
        if fid != 0:
            curr_func = jnp.where(curr == c, fid, curr_func)
            next_func = jnp.where(nxt == c, fid, next_func)

    # Flat index into the 3x3 transition matrix, kept in int32.
    flat = curr_func * 3 + next_func  # values in [0, 8]

    # 9-way compare/select against baked-in constants -> final float32 weight.
    out = jnp.full(curr.shape, trans_vals[0], dtype=jnp.float32)
    for k in range(1, 9):
        out = jnp.where(flat == k, trans_vals[k], out)
    out_ref[...] = out


def harmonic_attention(curr_idx, next_idx, func_ids, trans_vals, *, block_rows=512):
    """curr_idx, next_idx: (B,) int chord indices -> (B,) float32 transition weights."""
    curr_idx = jnp.asarray(curr_idx, jnp.int32).reshape(-1)
    next_idx = jnp.asarray(next_idx, jnp.int32).reshape(-1)
    B = curr_idx.shape[0]

    # Lane-dense layout: pad B and reshape to (rows, 128) so the batch maps to
    # the 128-lane axis; tile rows in blocks of `blk` (multiple of 8 sublanes).
    rows_needed = pl.cdiv(max(B, 1), LANES)
    rows_min = _round_up(rows_needed, 8)
    blk = _round_up(min(block_rows, rows_min), 8)
    rows = _round_up(rows_min, blk)
    pad = rows * LANES - B

    curr_p = jnp.pad(curr_idx, (0, pad)).reshape(rows, LANES)
    next_p = jnp.pad(next_idx, (0, pad)).reshape(rows, LANES)

    kernel = functools.partial(
        harmonic_attention_kernel, func_ids=func_ids, trans_vals=trans_vals
    )
    out = pl.pallas_call(
        kernel,
        out_shape=jax.ShapeDtypeStruct((rows, LANES), jnp.float32),
        grid=(rows // blk,),
        in_specs=[
            pl.BlockSpec((blk, LANES), lambda i: (i, 0)),
            pl.BlockSpec((blk, LANES), lambda i: (i, 0)),
        ],
        out_specs=pl.BlockSpec((blk, LANES), lambda i: (i, 0)),
        compiler_params=pltpu.CompilerParams(
            dimension_semantics=("parallel",),  # megacore sharding on v7x
        ),
    )(curr_p, next_p)
    return out.reshape(-1)[:B]


# ---------------------------------------------------------------------------
# Demo / self-check
# ---------------------------------------------------------------------------
if __name__ == "__main__":
    # Small deterministic chord vocabulary (the module's __init__ input).
    chord_names = ["C", "Dm", "Em", "F", "G7", "Am", "Bdim", "Cmaj7"]
    chord_to_idx = {name: i for i, name in enumerate(chord_names)}
    idx_to_chord = {i: name for name, i in chord_to_idx.items()}

    func_ids, trans_vals, function_map, tm = build_tables(chord_to_idx)

    def reference(curr_np, next_np):
        return np.array(
            [
                tm[function_map.get(idx_to_chord[int(c)], "T")][
                    function_map.get(idx_to_chord[int(n)], "T")
                ]
                for c, n in zip(curr_np, next_np)
            ],
            dtype=np.float32,
        )

    key = jax.random.PRNGKey(0)

    # Small batch (the module's per-pair forward, batched).
    B = 8
    kc, kn, key = jax.random.split(key, 3)
    curr_idx = jax.random.randint(kc, (B,), 0, len(chord_names), dtype=jnp.int32)
    next_idx = jax.random.randint(kn, (B,), 0, len(chord_names), dtype=jnp.int32)
    out = jax.block_until_ready(
        harmonic_attention(curr_idx, next_idx, func_ids, trans_vals)
    )
    ref = reference(np.asarray(curr_idx), np.asarray(next_idx))
    assert np.allclose(np.asarray(out), ref, atol=1e-6), (out, ref)

    # Second check that exercises multiple lane-dense rows + padding.
    B2 = 1000
    kc, kn, key = jax.random.split(key, 3)
    curr_idx2 = jax.random.randint(kc, (B2,), 0, len(chord_names), dtype=jnp.int32)
    next_idx2 = jax.random.randint(kn, (B2,), 0, len(chord_names), dtype=jnp.int32)
    out2 = jax.block_until_ready(
        harmonic_attention(curr_idx2, next_idx2, func_ids, trans_vals)
    )
    ref2 = reference(np.asarray(curr_idx2), np.asarray(next_idx2))
    assert np.allclose(np.asarray(out2), ref2, atol=1e-6)

    print("KERNEL_OK")
</pallas_src>

<mosaic_0001>
module attributes {stable_mosaic.version = 11 : i64} {
  func.func @harmonic_attention_kernel(%arg0: i32, %arg1: memref<8x128xi32, #tpu.memory_space<vmem>>, %arg2: memref<8x128xi32, #tpu.memory_space<vmem>>, %arg3: memref<8x128xf32, #tpu.memory_space<vmem>>) attributes {dimension_semantics = [#tpu.dimension_semantics<parallel>], iteration_bounds = array<i64: 1>, scalar_prefetch = 0 : i64, scratch_operands = 0 : i64, tpu.core_type = #tpu.core_type<tc>, window_params = [{transform_indices = @transform_0, window_bounds = array<i64: 8, 128>}, {transform_indices = @transform_1, window_bounds = array<i64: 8, 128>}, {transform_indices = @transform_2, window_bounds = array<i64: 8, 128>}]} {
    %c0 = arith.constant 0 : index
    %c0_0 = arith.constant 0 : index
    %0 = vector.load %arg1[%c0, %c0_0] : memref<8x128xi32, #tpu.memory_space<vmem>>, vector<8x128xi32>
    %c0_1 = arith.constant 0 : index
    %c0_2 = arith.constant 0 : index
    %1 = vector.load %arg2[%c0_1, %c0_2] : memref<8x128xi32, #tpu.memory_space<vmem>>, vector<8x128xi32>
    %c0_i32 = arith.constant 0 : i32
    %2 = vector.broadcast %c0_i32 : i32 to vector<8x128xi32>
    %c0_i32_3 = arith.constant 0 : i32
    %3 = vector.broadcast %c0_i32_3 : i32 to vector<8x128xi32>
    %c0_i32_4 = arith.constant 0 : i32
    %4 = vector.broadcast %c0_i32_4 : i32 to vector<8x128xi32>
    %5 = arith.cmpi eq, %0, %4 : vector<8x128xi32>
    %c2_i32 = arith.constant 2 : i32
    %6 = vector.broadcast %c2_i32 : i32 to vector<8x128xi32>
    %7 = arith.select %5, %6, %2 : vector<8x128xi1>, vector<8x128xi32>
    %c0_i32_5 = arith.constant 0 : i32
    %8 = vector.broadcast %c0_i32_5 : i32 to vector<8x128xi32>
    %9 = arith.cmpi eq, %1, %8 : vector<8x128xi32>
    %c2_i32_6 = arith.constant 2 : i32
    %10 = vector.broadcast %c2_i32_6 : i32 to vector<8x128xi32>
    %11 = arith.select %9, %10, %3 : vector<8x128xi1>, vector<8x128xi32>
    %c1_i32 = arith.constant 1 : i32
    %12 = vector.broadcast %c1_i32 : i32 to vector<8x128xi32>
    %13 = arith.cmpi eq, %0, %12 : vector<8x128xi32>
    %c2_i32_7 = arith.constant 2 : i32
    %14 = vector.broadcast %c2_i32_7 : i32 to vector<8x128xi32>
    %15 = arith.select %13, %14, %7 : vector<8x128xi1>, vector<8x128xi32>
    %c1_i32_8 = arith.constant 1 : i32
    %16 = vector.broadcast %c1_i32_8 : i32 to vector<8x128xi32>
    %17 = arith.cmpi eq, %1, %16 : vector<8x128xi32>
    %c2_i32_9 = arith.constant 2 : i32
    %18 = vector.broadcast %c2_i32_9 : i32 to vector<8x128xi32>
    %19 = arith.select %17, %18, %11 : vector<8x128xi1>, vector<8x128xi32>
    %c2_i32_10 = arith.constant 2 : i32
    %20 = vector.broadcast %c2_i32_10 : i32 to vector<8x128xi32>
    %21 = arith.cmpi eq, %0, %20 : vector<8x128xi32>
    %c2_i32_11 = arith.constant 2 : i32
    %22 = vector.broadcast %c2_i32_11 : i32 to vector<8x128xi32>
    %23 = arith.select %21, %22, %15 : vector<8x128xi1>, vector<8x128xi32>
    %c2_i32_12 = arith.constant 2 : i32
    %24 = vector.broadcast %c2_i32_12 : i32 to vector<8x128xi32>
    %25 = arith.cmpi eq, %1, %24 : vector<8x128xi32>
    %c2_i32_13 = arith.constant 2 : i32
    %26 = vector.broadcast %c2_i32_13 : i32 to vector<8x128xi32>
    %27 = arith.select %25, %26, %19 : vector<8x128xi1>, vector<8x128xi32>
    %c3_i32 = arith.constant 3 : i32
    %28 = vector.broadcast %c3_i32 : i32 to vector<8x128xi32>
    %29 = arith.cmpi eq, %0, %28 : vector<8x128xi32>
    %c2_i32_14 = arith.constant 2 : i32
    %30 = vector.broadcast %c2_i32_14 : i32 to vector<8x128xi32>
    %31 = arith.select %29, %30, %23 : vector<8x128xi1>, vector<8x128xi32>
    %c3_i32_15 = arith.constant 3 : i32
    %32 = vector.broadcast %c3_i32_15 : i32 to vector<8x128xi32>
    %33 = arith.cmpi eq, %1, %32 : vector<8x128xi32>
    %c2_i32_16 = arith.constant 2 : i32
    %34 = vector.broadcast %c2_i32_16 : i32 to vector<8x128xi32>
    %35 = arith.select %33, %34, %27 : vector<8x128xi1>, vector<8x128xi32>
    %c4_i32 = arith.constant 4 : i32
    %36 = vector.broadcast %c4_i32 : i32 to vector<8x128xi32>
    %37 = arith.cmpi eq, %0, %36 : vector<8x128xi32>
    %c2_i32_17 = arith.constant 2 : i32
    %38 = vector.broadcast %c2_i32_17 : i32 to vector<8x128xi32>
    %39 = arith.select %37, %38, %31 : vector<8x128xi1>, vector<8x128xi32>
    %c4_i32_18 = arith.constant 4 : i32
    %40 = vector.broadcast %c4_i32_18 : i32 to vector<8x128xi32>
    %41 = arith.cmpi eq, %1, %40 : vector<8x128xi32>
    %c2_i32_19 = arith.constant 2 : i32
    %42 = vector.broadcast %c2_i32_19 : i32 to vector<8x128xi32>
    %43 = arith.select %41, %42, %35 : vector<8x128xi1>, vector<8x128xi32>
    %c5_i32 = arith.constant 5 : i32
    %44 = vector.broadcast %c5_i32 : i32 to vector<8x128xi32>
    %45 = arith.cmpi eq, %0, %44 : vector<8x128xi32>
    %c2_i32_20 = arith.constant 2 : i32
    %46 = vector.broadcast %c2_i32_20 : i32 to vector<8x128xi32>
    %47 = arith.select %45, %46, %39 : vector<8x128xi1>, vector<8x128xi32>
    %c5_i32_21 = arith.constant 5 : i32
    %48 = vector.broadcast %c5_i32_21 : i32 to vector<8x128xi32>
    %49 = arith.cmpi eq, %1, %48 : vector<8x128xi32>
    %c2_i32_22 = arith.constant 2 : i32
    %50 = vector.broadcast %c2_i32_22 : i32 to vector<8x128xi32>
    %51 = arith.select %49, %50, %43 : vector<8x128xi1>, vector<8x128xi32>
    %c6_i32 = arith.constant 6 : i32
    %52 = vector.broadcast %c6_i32 : i32 to vector<8x128xi32>
    %53 = arith.cmpi eq, %0, %52 : vector<8x128xi32>
    %c2_i32_23 = arith.constant 2 : i32
    %54 = vector.broadcast %c2_i32_23 : i32 to vector<8x128xi32>
    %55 = arith.select %53, %54, %47 : vector<8x128xi1>, vector<8x128xi32>
    %c6_i32_24 = arith.constant 6 : i32
    %56 = vector.broadcast %c6_i32_24 : i32 to vector<8x128xi32>
    %57 = arith.cmpi eq, %1, %56 : vector<8x128xi32>
    %c2_i32_25 = arith.constant 2 : i32
    %58 = vector.broadcast %c2_i32_25 : i32 to vector<8x128xi32>
    %59 = arith.select %57, %58, %51 : vector<8x128xi1>, vector<8x128xi32>
    %c7_i32 = arith.constant 7 : i32
    %60 = vector.broadcast %c7_i32 : i32 to vector<8x128xi32>
    %61 = arith.cmpi eq, %0, %60 : vector<8x128xi32>
    %c1_i32_26 = arith.constant 1 : i32
    %62 = vector.broadcast %c1_i32_26 : i32 to vector<8x128xi32>
    %63 = arith.select %61, %62, %55 : vector<8x128xi1>, vector<8x128xi32>
    %c7_i32_27 = arith.constant 7 : i32
    %64 = vector.broadcast %c7_i32_27 : i32 to vector<8x128xi32>
    %65 = arith.cmpi eq, %1, %64 : vector<8x128xi32>
    %c1_i32_28 = arith.constant 1 : i32
    %66 = vector.broadcast %c1_i32_28 : i32 to vector<8x128xi32>
    %67 = arith.select %65, %66, %59 : vector<8x128xi1>, vector<8x128xi32>
    %c3_i32_29 = arith.constant 3 : i32
    %68 = vector.broadcast %c3_i32_29 : i32 to vector<8x128xi32>
    %69 = arith.muli %63, %68 : vector<8x128xi32>
    %70 = arith.addi %69, %67 : vector<8x128xi32>
    %cst = arith.constant 1.000000e-01 : f32
    %71 = vector.broadcast %cst : f32 to vector<8x128xf32>
    %c1_i32_30 = arith.constant 1 : i32
    %72 = vector.broadcast %c1_i32_30 : i32 to vector<8x128xi32>
    %73 = arith.cmpi eq, %70, %72 : vector<8x128xi32>
    %cst_31 = arith.constant 8.000000e-01 : f32
    %74 = vector.broadcast %cst_31 : f32 to vector<8x128xf32>
    %75 = arith.select %73, %74, %71 : vector<8x128xi1>, vector<8x128xf32>
    %c2_i32_32 = arith.constant 2 : i32
    %76 = vector.broadcast %c2_i32_32 : i32 to vector<8x128xi32>
    %77 = arith.cmpi eq, %70, %76 : vector<8x128xi32>
    %cst_33 = arith.constant 0.899999976 : f32
    %78 = vector.broadcast %cst_33 : f32 to vector<8x128xf32>
    %79 = arith.select %77, %78, %75 : vector<8x128xi1>, vector<8x128xf32>
    %c3_i32_34 = arith.constant 3 : i32
    %80 = vector.broadcast %c3_i32_34 : i32 to vector<8x128xi32>
    %81 = arith.cmpi eq, %70, %80 : vector<8x128xi32>
    %cst_35 = arith.constant 0.699999988 : f32
    %82 = vector.broadcast %cst_35 : f32 to vector<8x128xf32>
    %83 = arith.select %81, %82, %79 : vector<8x128xi1>, vector<8x128xf32>
    %c4_i32_36 = arith.constant 4 : i32
    %84 = vector.broadcast %c4_i32_36 : i32 to vector<8x128xi32>
    %85 = arith.cmpi eq, %70, %84 : vector<8x128xi32>
    %cst_37 = arith.constant 2.000000e-01 : f32
    %86 = vector.broadcast %cst_37 : f32 to vector<8x128xf32>
    %87 = arith.select %85, %86, %83 : vector<8x128xi1>, vector<8x128xf32>
    %c5_i32_38 = arith.constant 5 : i32
    %88 = vector.broadcast %c5_i32_38 : i32 to vector<8x128xi32>
    %89 = arith.cmpi eq, %70, %88 : vector<8x128xi32>
    %cst_39 = arith.constant 1.000000e+00 : f32
    %90 = vector.broadcast %cst_39 : f32 to vector<8x128xf32>
    %91 = arith.select %89, %90, %87 : vector<8x128xi1>, vector<8x128xf32>
    %c6_i32_40 = arith.constant 6 : i32
    %92 = vector.broadcast %c6_i32_40 : i32 to vector<8x128xi32>
    %93 = arith.cmpi eq, %70, %92 : vector<8x128xi32>
    %cst_41 = arith.constant 1.000000e+00 : f32
    %94 = vector.broadcast %cst_41 : f32 to vector<8x128xf32>
    %95 = arith.select %93, %94, %91 : vector<8x128xi1>, vector<8x128xf32>
    %c7_i32_42 = arith.constant 7 : i32
    %96 = vector.broadcast %c7_i32_42 : i32 to vector<8x128xi32>
    %97 = arith.cmpi eq, %70, %96 : vector<8x128xi32>
    %cst_43 = arith.constant 3.000000e-01 : f32
    %98 = vector.broadcast %cst_43 : f32 to vector<8x128xf32>
    %99 = arith.select %97, %98, %95 : vector<8x128xi1>, vector<8x128xf32>
    %c8_i32 = arith.constant 8 : i32
    %100 = vector.broadcast %c8_i32 : i32 to vector<8x128xi32>
    %101 = arith.cmpi eq, %70, %100 : vector<8x128xi32>
    %cst_44 = arith.constant 1.000000e-01 : f32
    %102 = vector.broadcast %cst_44 : f32 to vector<8x128xf32>
    %103 = arith.select %101, %102, %99 : vector<8x128xi1>, vector<8x128xf32>
    %c0_45 = arith.constant 0 : index
    %c0_46 = arith.constant 0 : index
    %104 = vector.load %arg3[%c0_45, %c0_46] : memref<8x128xf32, #tpu.memory_space<vmem>>, vector<8x128xf32>
    tpu.vector_store %arg3[%c0_45, %c0_46], %103 {strides = array<i32>} : memref<8x128xf32, #tpu.memory_space<vmem>>, vector<8x128xf32>,
    return
  }
  func.func @transform_0(%arg0: i32) -> (i32, i32) {
    %c0_i32 = arith.constant 0 : i32
    %c0_i32_0 = arith.constant 0 : i32
    return %arg0, %c0_i32 : i32, i32
  }
  func.func @transform_1(%arg0: i32) -> (i32, i32) {
    %c0_i32 = arith.constant 0 : i32
    %c0_i32_0 = arith.constant 0 : i32
    return %arg0, %c0_i32 : i32, i32
  }
  func.func @transform_2(%arg0: i32) -> (i32, i32) {
    %c0_i32 = arith.constant 0 : i32
    %c0_i32_0 = arith.constant 0 : i32
    return %arg0, %c0_i32 : i32, i32
  }
}

</mosaic_0001>

<bundles_post_ra>
// kernel: tpu_custom_call.1
= control target key start
LH: loop header
LB: loop body
LE: loop exit
PB: predicated region body
PF: predicated region fallthrough
CT: control target
= control target key end

     0   :  { %7 = vsyncpa [#allocation3], 0  ;;  %s238_s0 = inlined_call_operand.hbm [shape: s32[8,128], index: 0, kind: input, shape index: {}]   ;;  %s239_s1 = inlined_call_operand.hbm [shape: s32[8,128], index: 1, kind: input, shape index: {}]   ;;  %s240_s2 = inlined_call_operand.hbm [shape: f32[8,128], index: 2, kind: output, shape index: {}]  }
   0x1   :  { %8 = vsyncpa [#allocation6], 0 }
   0x2   :  { %9 = vsyncpa [#allocation4], 0  ;;  %s182_s9 = smov [#allocation2]   ;;  %s183_s11 = smov [#allocation5]  }
   0x3   :  { %s16_s10 = sshll.u32 %s182_s9, 4  ;;  %s26_s12 = sshll.u32 %s183_s11, 4  ;;  %s17_s10 = int_to_ptr.vmem [resolvable:$true] %s16_s10  ;;  %s27_s12 = int_to_ptr.vmem [resolvable:$true] %s26_s12 }
   0x4   :  { %s110_s15 = scalar_lea.hbm %s238_s0, 128 }
   0x5   :  { %p111_p0 = scmp.ne.s32.totalorder %s238_s0, %s110_s15  ;;  %p114_p1 = scmp.lt.u32.totalorder %s110_s15, %s238_s0 }
   0x7   :  { %p116_p2 = pnand %p114_p1, %p111_p0 }
   0x9   :  { %119 = shalt.err (!%p116_p2)
}
   0xa   :  { %s120_s20 = scalar_lea.vmem %s17_s10, 128  ;;  %p125_p4 = scmp.lt.s32.totalorder %s17_s10, %s17_s10 }
   0xb   :  { %p121_p3 = scmp.ne.s32.totalorder %s17_s10, %s120_s20  ;;  %p126_p5 = scmp.lt.s32.totalorder %s120_s20, %s120_s20 }
   0xd   :  { %p127_p6 = por %p126_p5, %p125_p4 }
   0xf   :  { %p128_p7 = pnand %p127_p6, %p121_p3 }
  0x11   :  { %131 = shalt.err (!%p128_p7)
}
  0x12   :  { %19 = dma.hbm_to_vmem [thread:$0]  %s238_s0, 128, %s17_s10, [#allocation3]  }
  0x13   :  { %s132_s25 = scalar_lea.hbm %s239_s1, 128 }
  0x14   :  { %p133_p8 = scmp.ne.s32.totalorder %s239_s1, %s132_s25  ;;  %p136_p9 = scmp.lt.u32.totalorder %s132_s25, %s239_s1 }
  0x16   :  { %p138_p10 = pnand %p136_p9, %p133_p8 }
  0x18   :  { %141 = shalt.err (!%p138_p10)
}
  0x19   :  { %s142_s30 = scalar_lea.vmem %s27_s12, 128  ;;  %p147_p12 = scmp.lt.s32.totalorder %s27_s12, %s27_s12 }
  0x1a   :  { %p143_p11 = scmp.ne.s32.totalorder %s27_s12, %s142_s30  ;;  %p148_p13 = scmp.lt.s32.totalorder %s142_s30, %s142_s30 }
  0x1c   :  { %p149_p0 = por %p148_p13, %p147_p12 }
  0x1e   :  { %p150_p1 = pnand %p149_p0, %p143_p11 }
  0x20   :  { %153 = shalt.err (!%p150_p1)
}
  0x21   :  { %29 = dma.hbm_to_vmem [thread:$0]  %s239_s1, 128, %s27_s12, [#allocation6]  }
  0x22   :  { %176 = dma.done.wait [#allocation3], 128  }
  0x23   :  { %177 = vsyncadd [#allocation3], 4294967168 }
  0x24   :  { %178 = dma.done.wait [#allocation6], 128  }
  0x25   :  { %179 = vsyncadd [#allocation6], 4294967168  ;;  %v36_v0 = vld [vmem:[#allocation2] sm:$0xff]  ;;  %v37_v1 = vld [vmem:[#allocation5] sm:$0xff]  ;;  %v184_v2 = vmov 0   ;;  %s186_s1 = smov [#allocation7]  }
  0x26   :  { %vm38_vm0 = vcmp.eq.s32.totalorder %v36_v0, 0  ;;  %vm40_vm1 = vcmp.eq.s32.totalorder %v37_v1, 0  ;;  %vm42_vm2 = vcmp.eq.s32.totalorder %v36_v0, 1  ;;  %vm44_vm3 = vcmp.eq.s32.totalorder %v37_v1, 1  ;;  %s95_s4 = sshll.u32 %s186_s1, 4  ;;  %s96_s4 = int_to_ptr.vmem [resolvable:$true] %s95_s4 }
  0x27   :  { %v39_v3 = vsel %vm38_vm0, 2, %v184_v2  ;;  %v41_v4 = vsel %vm40_vm1, 2, %v184_v2  ;;  %vm46_vm4 = vcmp.eq.s32.totalorder %v36_v0, 2  ;;  %vm48_vm5 = vcmp.eq.s32.totalorder %v37_v1, 2  ;;  %s154_s5 = scalar_lea.vmem %s96_s4, 128  ;;  %p159_p3 = scmp.lt.s32.totalorder %s96_s4, %s96_s4 }
  0x28   :  { %v43_v5 = vsel %vm42_vm2, 2, %v39_v3  ;;  %v45_v6 = vsel %vm44_vm3, 2, %v41_v4  ;;  %vm50_vm6 = vcmp.eq.s32.totalorder %v36_v0, 3  ;;  %vm52_vm7 = vcmp.eq.s32.totalorder %v37_v1, 3  ;;  %p155_p2 = scmp.ne.s32.totalorder %s96_s4, %s154_s5  ;;  %p160_p4 = scmp.lt.s32.totalorder %s154_s5, %s154_s5 }
  0x29   :  { %v47_v7 = vsel %vm46_vm4, 2, %v43_v5  ;;  %v49_v8 = vsel %vm48_vm5, 2, %v45_v6  ;;  %vm54_vm8 = vcmp.eq.s32.totalorder %v36_v0, 4  ;;  %vm56_vm9 = vcmp.eq.s32.totalorder %v37_v1, 4 }
  0x2a   :  { %v51_v9 = vsel %vm50_vm6, 2, %v47_v7  ;;  %v53_v10 = vsel %vm52_vm7, 2, %v49_v8  ;;  %vm58_vm10 = vcmp.eq.s32.totalorder %v36_v0, 5  ;;  %vm60_vm11 = vcmp.eq.s32.totalorder %v37_v1, 5  ;;  %p161_p5 = por %p160_p4, %p159_p3 }
  0x2b   :  { %v55_v11 = vsel %vm54_vm8, 2, %v51_v9  ;;  %v57_v12 = vsel %vm56_vm9, 2, %v53_v10  ;;  %vm62_vm12 = vcmp.eq.s32.totalorder %v36_v0, 6  ;;  %vm64_vm13 = vcmp.eq.s32.totalorder %v37_v1, 6 }
  0x2c   :  { %v59_v13 = vsel %vm58_vm10, 2, %v55_v11  ;;  %v61_v14 = vsel %vm60_vm11, 2, %v57_v12  ;;  %vm66_vm14 = vcmp.eq.s32.totalorder %v36_v0, 7  ;;  %vm68_vm15 = vcmp.eq.s32.totalorder %v37_v1, 7  ;;  %p162_p6 = pnand %p161_p5, %p155_p2 }
  0x2d   :  { %v63_v15 = vsel %vm62_vm12, 2, %v59_v13  ;;  %v65_v16 = vsel %vm64_vm13, 2, %v61_v14  ;;  %v185_v21 = vmov 0.1  }
  0x2e   :  { %v67_v17 = vsel %vm66_vm14, 1, %v63_v15  ;;  %v69_v18 = vsel %vm68_vm15, 1, %v65_v16 }
  0x2f   :  { %v70_v19 = vmul.u32 3, %v67_v17 }
  0x31   :  { %v71_v20 = vadd.s32 %v70_v19, %v69_v18 }
  0x33   :  { %vm72_vm0 = vcmp.eq.s32.totalorder %v71_v20, 1  ;;  %vm74_vm1 = vcmp.eq.s32.totalorder %v71_v20, 2  ;;  %vm76_vm2 = vcmp.eq.s32.totalorder %v71_v20, 3  ;;  %vm78_vm3 = vcmp.eq.s32.totalorder %v71_v20, 4 }
  0x34   :  { %v73_v22 = vsel %vm72_vm0, 0.8, %v185_v21  ;;  %vm80_vm4 = vcmp.eq.s32.totalorder %v71_v20, 5  ;;  %vm82_vm5 = vcmp.eq.s32.totalorder %v71_v20, 6  ;;  %vm84_vm6 = vcmp.eq.s32.totalorder %v71_v20, 7 }
  0x35   :  { %v75_v23 = vsel %vm74_vm1, 0.9, %v73_v22  ;;  %vm86_vm7 = vcmp.eq.s32.totalorder %v71_v20, 8 }
  0x36   :  { %v77_v24 = vsel %vm76_vm2, 0.7, %v75_v23 }
  0x37   :  { %v79_v25 = vsel %vm78_vm3, 0.2, %v77_v24 }
  0x38   :  { %v81_v26 = vsel %vm80_vm4, 1.0, %v79_v25 }
  0x39   :  { %v83_v27 = vsel %vm82_vm5, 1.0, %v81_v26 }
  0x3a   :  { %v85_v28 = vsel %vm84_vm6, 0.3, %v83_v27 }
  0x3b   :  { %v87_v29 = vsel %vm86_vm7, 0.1, %v85_v28 }
  0x3c   :  { %88 = vst [vmem:[#allocation7] sm:$0xff] %v87_v29 }
  0x3d   :  { %165 = shalt.err (!%p162_p6)
}
  0x3e   :  { %s166_s8 = scalar_lea.hbm %s240_s2, 128 }
  0x3f   :  { %p167_p7 = scmp.ne.s32.totalorder %s240_s2, %s166_s8  ;;  %p170_p8 = scmp.lt.u32.totalorder %s166_s8, %s240_s2 }
  0x41   :  { %p172_p9 = pnand %p170_p8, %p167_p7 }
  0x43   :  { %175 = shalt.err (!%p172_p9)
}
  0x44   :  { %98 = dma.vmem_to_hbm [thread:$0]  %s96_s4, 128, %s240_s2, [#allocation4]  }
  0x45   :  { %180 = dma.done.wait [#allocation4], 128  }
  0x46   :  { %181 = vsyncadd [#allocation4], 4294967168 }
  0x47   :  { %102 = vsyncpa [#allocation3], 1 }
  0x48   :  { %103 = vsyncpa [#allocation6], 1 }
  0x49   :  { %104 = vsyncpa [#allocation4], 1 }

</bundles_post_ra>
